<compile_context>
chip_gen: v6e
topology: v6e:2x2x1
jax: 0.10.0
libtpu: 0.0.40
codegen_flags: <defaults>
</compile_context>

<pallas_src>
import math
import functools

import jax
import jax.numpy as jnp
from jax import lax
from jax.experimental import pallas as pl
from jax.experimental.pallas import tpu as pltpu


# ----------------------- one-time host-side preparation -----------------------
def _rope_tables(seq_len, d, theta_base=10000.0):
    """Per-lane cos/sin tables with interleaved (even/odd) pairing, matching
    the PyTorch rope(): lane j uses frequency theta_base**(-2*(j//2)/d)."""
    pos = jnp.arange(seq_len, dtype=jnp.float32)[:, None]            # (S, 1)
    pair = (jnp.arange(d) // 2).astype(jnp.float32)[None, :]         # (1, d)
    inv_freq = theta_base ** (-2.0 * pair / d)                       # (1, d)
    theta = pos * inv_freq                                           # (S, d)
    return jnp.cos(theta), jnp.sin(theta)


def _rope_pair_matrix(d):
    """(d, d) matrix P with (x @ P)[2i] = -x[2i+1], (x @ P)[2i+1] = +x[2i],
    so rope(x) = x*cos + (x @ P)*sin.  Folded into the weights on the host."""
    a = jnp.arange(d)[:, None]
    j = jnp.arange(d)[None, :]
    plus = ((a % 2 == 0) & (j == a + 1)).astype(jnp.float32)
    minus = ((a % 2 == 1) & (j == a - 1)).astype(jnp.float32)
    return plus - minus


def init_attention_head(w_q, w_k, w_v, mask, batch_size, seq_len):
    """Hoisted host prep: fused weight with RoPE folded in, flattened RoPE
    tables, and the combined (block-diagonal + user-mask) additive bias.
    Computed once; the per-call path only reshapes x and launches the kernel."""
    E, d_h = w_q.shape
    P = _rope_pair_matrix(d_h)
    # [W_Q | W_K | W_V | W_Q@P | W_V@P]  -> one MXU push yields q,k,v,q_rot,v_rot
    w_fused = jnp.concatenate(
        [w_q, w_k, w_v, w_q @ P, w_v @ P], axis=1).astype(jnp.float32)

    cos_s, sin_s = _rope_tables(seq_len, d_h)
    cos = jnp.tile(cos_s, (batch_size, 1))                           # (B*S, d_h)
    sin = jnp.tile(sin_s, (batch_size, 1))

    # Additive bias over the flattened (B*S, B*S) score matrix:
    #   0        where same-batch AND user mask keeps the entry
    #   -1e30    elsewhere (cross-batch or user-masked) -> exp underflows to 0.
    n = batch_size * seq_len
    row = jnp.arange(n)
    same_batch = (row[:, None] // seq_len) == (row[None, :] // seq_len)
    user_keep = jnp.tile(mask != 0, (batch_size, batch_size))
    keep = same_batch & user_keep
    bias = jnp.where(keep, 0.0, -1e30).astype(jnp.float32)           # (B*S, B*S)

    return {"w_fused": w_fused, "cos": cos, "sin": sin, "bias": bias}


# --------------------------------- kernel -----------------------------------
def _attention_head_kernel(x_ref, w_ref, cos_ref, sin_ref, bias_ref, o_ref, *,
                           d_h, scale):
    # Single fused projection on the MXU: (B*S, E) @ (E, 5*d_h), f32 accumulate.
    proj = jnp.dot(x_ref[...], w_ref[...],
                   preferred_element_type=jnp.float32)               # (BS, 5dh)

    q = proj[:, 0 * d_h:1 * d_h]
    k = proj[:, 1 * d_h:2 * d_h]
    v = proj[:, 2 * d_h:3 * d_h]
    q_rot = proj[:, 3 * d_h:4 * d_h]                                 # (x @ W_Q @ P)
    v_rot = proj[:, 4 * d_h:5 * d_h]                                 # (x @ W_V @ P)

    # RoPE on Q and V (the reference applies it to Q and V, not K) — pure VPU.
    cos = cos_ref[...]
    sin = sin_ref[...]
    q = q * cos + q_rot * sin
    v = v * cos + v_rot * sin

    # scores = Q K^T / sqrt(d_h), contraction on the last axis of both
    # (no K transpose), plus the precomputed block-diag/user-mask bias.
    scores = lax.dot_general(
        q, k, dimension_numbers=(((1,), (1,)), ((), ())),
        preferred_element_type=jnp.float32) * scale + bias_ref[...]  # (BS, BS)

    # Numerically-stable softmax in f32.  Cross-batch / masked entries are
    # -1e30 -> exactly 0 after exp, so batches never mix in attn @ V.
    m = jnp.max(scores, axis=-1, keepdims=True)
    e = jnp.exp(scores - m)
    denom = jnp.sum(e, axis=-1, keepdims=True)
    attn = e * pl.reciprocal(denom, approx=True)                     # EUP vrcp

    o_ref[...] = jnp.dot(attn, v,
                         preferred_element_type=jnp.float32).astype(o_ref.dtype)


# -------------------------------- wrapper ------------------------------------
@jax.jit
def attention_head_apply(params, x):
    B, S, E = x.shape
    BS, d_h = params["cos"].shape
    assert BS == B * S
    x2 = x.reshape(BS, E).astype(jnp.float32)

    kernel = functools.partial(_attention_head_kernel, d_h=d_h,
                               scale=1.0 / math.sqrt(d_h))
    out = pl.pallas_call(
        kernel,
        out_shape=jax.ShapeDtypeStruct((BS, d_h), jnp.float32),
        grid=(1,),                                      # single step: no per-step overhead
        in_specs=[
            pl.BlockSpec((BS, E), lambda i: (0, 0)),                  # x (flattened)
            pl.BlockSpec(params["w_fused"].shape, lambda i: (0, 0)),  # fused weight
            pl.BlockSpec((BS, d_h), lambda i: (0, 0)),                # cos table
            pl.BlockSpec((BS, d_h), lambda i: (0, 0)),                # sin table
            pl.BlockSpec((BS, BS), lambda i: (0, 0)),                 # mask bias
        ],
        out_specs=pl.BlockSpec((BS, d_h), lambda i: (0, 0)),
        compiler_params=pltpu.CompilerParams(
            dimension_semantics=("arbitrary",),
            vmem_limit_bytes=16 * 1024 * 1024),
    )(x2, params["w_fused"], params["cos"], params["sin"], params["bias"])
    return out.reshape(B, S, d_h)


# ---------------- pure-JAX reference (mirrors the PyTorch code) ----------------
def _rope_ref(x, theta_base=10000.0):
    B, S, d = x.shape
    pos = jnp.arange(S, dtype=jnp.float32)[None, :, None]            # (1, S, 1)
    p = jnp.arange(1, d // 2 + 1, dtype=jnp.float32)
    theta_p = 1.0 / theta_base ** (2.0 * (p - 1) / d)
    theta = pos * theta_p                                            # (1, S, d/2)
    sin_t, cos_t = jnp.sin(theta), jnp.cos(theta)
    x1, x2 = x[..., 0::2], x[..., 1::2]
    r1 = x1 * cos_t - x2 * sin_t
    r2 = x1 * sin_t + x2 * cos_t
    return jnp.stack((r1, r2), axis=-1).reshape(B, S, d)


def attention_head_ref(x, w_q, w_k, w_v, mask):
    d_h = w_q.shape[1]
    Q = x @ w_q
    K = x @ w_k
    V = x @ w_v
    Q, V = _rope_ref(Q), _rope_ref(V)
    scores = jnp.einsum("bqd,bkd->bqk", Q, K) / math.sqrt(d_h)
    scores = jnp.where(mask[None, :, :] == 0, -jnp.inf, scores)
    attn = jax.nn.softmax(scores, axis=-1)
    return jnp.einsum("bqk,bkd->bqd", attn, V)


if __name__ == "__main__":
    B, S, E, d_h = 2, 8, 32, 16

    key = jax.random.PRNGKey(0)
    kx, kq, kk, kv = jax.random.split(key, 4)
    x = jax.random.normal(kx, (B, S, E), dtype=jnp.float32)
    w_q = jax.random.normal(kq, (E, d_h), dtype=jnp.float32) / math.sqrt(E)
    w_k = jax.random.normal(kk, (E, d_h), dtype=jnp.float32) / math.sqrt(E)
    w_v = jax.random.normal(kv, (E, d_h), dtype=jnp.float32) / math.sqrt(E)

    # Causal mask (1 = keep, 0 = mask out), broadcast over batch.
    mask = jnp.tril(jnp.ones((S, S), dtype=jnp.float32))

    # One-time host prep (hoisted out of the per-call path).
    params = init_attention_head(w_q, w_k, w_v, mask, B, S)

    out = attention_head_apply(params, x)
    out = jax.block_until_ready(out)

    ref = attention_head_ref(x, w_q, w_k, w_v, mask)
    assert out.shape == (B, S, d_h)
    max_err = float(jnp.max(jnp.abs(out - ref)))
    # MXU default precision + approx reciprocal -> small tolerance.
    assert jnp.allclose(out, ref, atol=2e-2, rtol=2e-2), max_err

    print("KERNEL_OK")
</pallas_src>

<mosaic_0001>
module attributes {stable_mosaic.version = 11 : i64} {
  func.func @_attention_head_kernel(%arg0: i32, %arg1: memref<16x32xf32, #tpu.memory_space<vmem>>, %arg2: memref<32x80xf32, #tpu.memory_space<vmem>>, %arg3: memref<16x16xf32, #tpu.memory_space<vmem>>, %arg4: memref<16x16xf32, #tpu.memory_space<vmem>>, %arg5: memref<16x16xf32, #tpu.memory_space<vmem>>, %arg6: memref<16x16xf32, #tpu.memory_space<vmem>>) attributes {dimension_semantics = [#tpu.dimension_semantics<arbitrary>], iteration_bounds = array<i64: 1>, scalar_prefetch = 0 : i64, scratch_operands = 0 : i64, tpu.core_type = #tpu.core_type<tc>, window_params = [{pipeline_mode = #tpu.pipeline_mode<synchronous>, transform_indices = @transform_0, window_bounds = array<i64: 16, 32>}, {pipeline_mode = #tpu.pipeline_mode<synchronous>, transform_indices = @transform_1, window_bounds = array<i64: 32, 80>}, {pipeline_mode = #tpu.pipeline_mode<synchronous>, transform_indices = @transform_2, window_bounds = array<i64: 16, 16>}, {pipeline_mode = #tpu.pipeline_mode<synchronous>, transform_indices = @transform_3, window_bounds = array<i64: 16, 16>}, {pipeline_mode = #tpu.pipeline_mode<synchronous>, transform_indices = @transform_4, window_bounds = array<i64: 16, 16>}, {pipeline_mode = #tpu.pipeline_mode<synchronous>, transform_indices = @transform_5, window_bounds = array<i64: 16, 16>}]} {
    %c0 = arith.constant 0 : index
    %c0_0 = arith.constant 0 : index
    %0 = vector.load %arg1[%c0, %c0_0] : memref<16x32xf32, #tpu.memory_space<vmem>>, vector<16x32xf32>
    %c0_1 = arith.constant 0 : index
    %c0_2 = arith.constant 0 : index
    %1 = vector.load %arg2[%c0_1, %c0_2] : memref<32x80xf32, #tpu.memory_space<vmem>>, vector<32x80xf32>
    %cst = arith.constant dense<0.000000e+00> : vector<16x80xf32>
    %2 = tpu.matmul %0, %1, %cst {dimension_numbers = #tpu.dot_dimension_numbers<[1], [0], [0], [1], [0, 0, 1, 1], [], []>} : vector<16x32xf32>, vector<32x80xf32>, vector<16x80xf32> -> vector<16x80xf32>
    %3 = vector.extract_strided_slice %2 {offsets = [0, 0], sizes = [16, 16], strides = [1, 1]} : vector<16x80xf32> to vector<16x16xf32>
    %4 = vector.extract_strided_slice %2 {offsets = [0, 16], sizes = [16, 16], strides = [1, 1]} : vector<16x80xf32> to vector<16x16xf32>
    %5 = vector.extract_strided_slice %2 {offsets = [0, 32], sizes = [16, 16], strides = [1, 1]} : vector<16x80xf32> to vector<16x16xf32>
    %6 = vector.extract_strided_slice %2 {offsets = [0, 48], sizes = [16, 16], strides = [1, 1]} : vector<16x80xf32> to vector<16x16xf32>
    %7 = vector.extract_strided_slice %2 {offsets = [0, 64], sizes = [16, 16], strides = [1, 1]} : vector<16x80xf32> to vector<16x16xf32>
    %c0_3 = arith.constant 0 : index
    %c0_4 = arith.constant 0 : index
    %8 = vector.load %arg3[%c0_3, %c0_4] : memref<16x16xf32, #tpu.memory_space<vmem>>, vector<16x16xf32>
    %c0_5 = arith.constant 0 : index
    %c0_6 = arith.constant 0 : index
    %9 = vector.load %arg4[%c0_5, %c0_6] : memref<16x16xf32, #tpu.memory_space<vmem>>, vector<16x16xf32>
    %10 = arith.mulf %3, %8 : vector<16x16xf32>
    %11 = arith.mulf %6, %9 : vector<16x16xf32>
    %12 = arith.addf %10, %11 : vector<16x16xf32>
    %13 = arith.mulf %5, %8 : vector<16x16xf32>
    %14 = arith.mulf %7, %9 : vector<16x16xf32>
    %15 = arith.addf %13, %14 : vector<16x16xf32>
    %cst_7 = arith.constant dense<0.000000e+00> : vector<16x16xf32>
    %16 = tpu.matmul %12, %4, %cst_7 {dimension_numbers = #tpu.dot_dimension_numbers<[1], [1], [0], [0], [0, 0, 1, 0], [], []>} : vector<16x16xf32>, vector<16x16xf32>, vector<16x16xf32> -> vector<16x16xf32>
    %cst_8 = arith.constant 2.500000e-01 : f32
    %17 = vector.broadcast %cst_8 : f32 to vector<16x16xf32>
    %18 = arith.mulf %16, %17 : vector<16x16xf32>
    %c0_9 = arith.constant 0 : index
    %c0_10 = arith.constant 0 : index
    %19 = vector.load %arg5[%c0_9, %c0_10] : memref<16x16xf32, #tpu.memory_space<vmem>>, vector<16x16xf32>
    %20 = arith.addf %18, %19 : vector<16x16xf32>
    %cst_11 = arith.constant dense<0xFF800000> : vector<16xf32>
    %21 = vector.multi_reduction <maximumf>, %20, %cst_11 [1] : vector<16x16xf32> to vector<16xf32>
    %22 = vector.shape_cast %21 : vector<16xf32> to vector<16x1xf32>
    %23 = vector.broadcast %22 : vector<16x1xf32> to vector<16x16xf32>
    %24 = arith.subf %20, %23 : vector<16x16xf32>
    %25 = math.exp %24 : vector<16x16xf32>
    %cst_12 = arith.constant dense<0.000000e+00> : vector<16xf32>
    %26 = vector.multi_reduction <add>, %25, %cst_12 [1] : vector<16x16xf32> to vector<16xf32>
    %27 = vector.shape_cast %26 : vector<16xf32> to vector<16x1xf32>
    %28 = tpu.reciprocal %27 {approx = true} : vector<16x1xf32> -> vector<16x1xf32>
    %29 = vector.broadcast %28 : vector<16x1xf32> to vector<16x16xf32>
    %30 = arith.mulf %25, %29 : vector<16x16xf32>
    %cst_13 = arith.constant dense<0.000000e+00> : vector<16x16xf32>
    %31 = tpu.matmul %30, %15, %cst_13 {dimension_numbers = #tpu.dot_dimension_numbers<[1], [0], [0], [1], [0, 0, 1, 1], [], []>} : vector<16x16xf32>, vector<16x16xf32>, vector<16x16xf32> -> vector<16x16xf32>
    %c0_14 = arith.constant 0 : index
    %c0_15 = arith.constant 0 : index
    %32 = vector.load %arg6[%c0_14, %c0_15] : memref<16x16xf32, #tpu.memory_space<vmem>>, vector<16x16xf32>
    tpu.vector_store %arg6[%c0_14, %c0_15], %31 {strides = array<i32>} : memref<16x16xf32, #tpu.memory_space<vmem>>, vector<16x16xf32>,
    return
  }
  func.func @transform_0(%arg0: i32) -> (i32, i32) {
    %c0_i32 = arith.constant 0 : i32
    %c0_i32_0 = arith.constant 0 : i32
    %c0_i32_1 = arith.constant 0 : i32
    return %c0_i32, %c0_i32_0 : i32, i32
  }
  func.func @transform_1(%arg0: i32) -> (i32, i32) {
    %c0_i32 = arith.constant 0 : i32
    %c0_i32_0 = arith.constant 0 : i32
    %c0_i32_1 = arith.constant 0 : i32
    return %c0_i32, %c0_i32_0 : i32, i32
  }
  func.func @transform_2(%arg0: i32) -> (i32, i32) {
    %c0_i32 = arith.constant 0 : i32
    %c0_i32_0 = arith.constant 0 : i32
    %c0_i32_1 = arith.constant 0 : i32
    return %c0_i32, %c0_i32_0 : i32, i32
  }
  func.func @transform_3(%arg0: i32) -> (i32, i32) {
    %c0_i32 = arith.constant 0 : i32
    %c0_i32_0 = arith.constant 0 : i32
    %c0_i32_1 = arith.constant 0 : i32
    return %c0_i32, %c0_i32_0 : i32, i32
  }
  func.func @transform_4(%arg0: i32) -> (i32, i32) {
    %c0_i32 = arith.constant 0 : i32
    %c0_i32_0 = arith.constant 0 : i32
    %c0_i32_1 = arith.constant 0 : i32
    return %c0_i32, %c0_i32_0 : i32, i32
  }
  func.func @transform_5(%arg0: i32) -> (i32, i32) {
    %c0_i32 = arith.constant 0 : i32
    %c0_i32_0 = arith.constant 0 : i32
    %c0_i32_1 = arith.constant 0 : i32
    return %c0_i32, %c0_i32_0 : i32, i32
  }
}

</mosaic_0001>

<bundles_post_ra>
// kernel: attention_head_apply.1
= control target key start
LH: loop header
LB: loop body
LE: loop exit
PB: predicated region body
PF: predicated region fallthrough
CT: control target
= control target key end

     0   :  { %10 = vsyncpa [#allocation3], 0  ;;  %s768_s0 = inlined_call_operand.hbm [shape: f32[16,32], index: 0, kind: input, shape index: {}]   ;;  %s769_s1 = inlined_call_operand.hbm [shape: f32[32,80], index: 1, kind: input, shape index: {}]   ;;  %s770_s2 = inlined_call_operand.hbm [shape: f32[16,16], index: 2, kind: input, shape index: {}]   ;;  %s771_s3 = inlined_call_operand.hbm [shape: f32[16,16], index: 3, kind: input, shape index: {}]   ;;  %s772_s4 = inlined_call_operand.hbm [shape: f32[16,16], index: 4, kind: input, shape index: {}]   ;;  %s773_s5 = inlined_call_operand.hbm [shape: f32[16,16], index: 5, kind: output, shape index: {}]  }
   0x1   :  { %11 = vsyncpa [#allocation6], 0 }
   0x2   :  { %12 = vsyncpa [#allocation9], 0 }
   0x3   :  { %13 = vsyncpa [#allocation4], 0  ;;  %s658_s18 = smov [#allocation5]   ;;  %s659_s20 = smov [#allocation8]  }
   0x4   :  { %s31_s19 = sshll.u32 %s658_s18, 4  ;;  %s55_s21 = sshll.u32 %s659_s20, 4  ;;  %s32_s19 = int_to_ptr.vmem [resolvable:$true] %s31_s19  ;;  %s56_s21 = int_to_ptr.vmem [resolvable:$true] %s55_s21 }
   0x5   :  { %s538_s22 = scalar_lea.vmem %s32_s19, 512  ;;  %p543_p1 = scmp.lt.s32.totalorder %s32_s19, %s32_s19 }
   0x6   :  { %p539_p0 = scmp.ne.s32.totalorder %s32_s19, %s538_s22  ;;  %p544_p2 = scmp.lt.s32.totalorder %s538_s22, %s538_s22 }
   0x8   :  { %p545_p3 = por %p544_p2, %p543_p1 }
   0xa   :  { %p546_p4 = pnand %p545_p3, %p539_p0 }
   0xc   :  { %549 = shalt.err (!%p546_p4)
}
   0xd   :  { %s660_s23 = smov 128   ;;  %s661_s24 = smov 8  }
   0xe   :  { %37 = dma.hbm_to_vmem [thread:$0]  %s769_s1, 512, %s32_s19, [#allocation6], %s660_s23, %s660_s23, %s661_s24  }
   0xf   :  { %s558_s27 = scalar_lea.vmem %s56_s21, 256  ;;  %p563_p6 = scmp.lt.s32.totalorder %s56_s21, %s56_s21 }
  0x10   :  { %p559_p5 = scmp.ne.s32.totalorder %s56_s21, %s558_s27  ;;  %p564_p7 = scmp.lt.s32.totalorder %s558_s27, %s558_s27 }
  0x12   :  { %p565_p8 = por %p564_p7, %p563_p6 }
  0x14   :  { %p566_p9 = pnand %p565_p8, %p559_p5 }
  0x16   :  { %569 = shalt.err (!%p566_p9)
}
  0x17   :  { %61 = dma.hbm_to_vmem [thread:$0]  %s771_s3, 256, %s56_s21, [#allocation9], %s660_s23, %s660_s23, %s661_s24  }
  0x18   :  { %s662_s30 = smov [#allocation2]   ;;  %s663_s7 = smov [#allocation7]  }
  0x19   :  { %s19_s6 = sshll.u32 %s662_s30, 4  ;;  %s43_s8 = sshll.u32 %s663_s7, 4  ;;  %s20_s6 = int_to_ptr.vmem [resolvable:$true] %s19_s6  ;;  %s44_s8 = int_to_ptr.vmem [resolvable:$true] %s43_s8 }
  0x1a   :  { %s578_s1 = scalar_lea.vmem %s20_s6, 256  ;;  %p583_p11 = scmp.lt.s32.totalorder %s20_s6, %s20_s6 }
  0x1b   :  { %p579_p10 = scmp.ne.s32.totalorder %s20_s6, %s578_s1  ;;  %p584_p12 = scmp.lt.s32.totalorder %s578_s1, %s578_s1 }
  0x1d   :  { %p585_p13 = por %p584_p12, %p583_p11 }
  0x1f   :  { %p586_p0 = pnand %p585_p13, %p579_p10 }
  0x21   :  { %589 = shalt.err (!%p586_p0)
}
  0x22   :  { %25 = dma.hbm_to_vmem [thread:$0]  %s768_s0, 256, %s20_s6, [#allocation3], %s660_s23, %s660_s23, %s661_s24  }
  0x23   :  { %s598_s3 = scalar_lea.vmem %s44_s8, 256  ;;  %p603_p2 = scmp.lt.s32.totalorder %s44_s8, %s44_s8 }
  0x24   :  { %p599_p1 = scmp.ne.s32.totalorder %s44_s8, %s598_s3  ;;  %p604_p3 = scmp.lt.s32.totalorder %s598_s3, %s598_s3 }
  0x26   :  { %p605_p4 = por %p604_p3, %p603_p2 }
  0x28   :  { %p606_p5 = pnand %p605_p4, %p599_p1 }
  0x2a   :  { %609 = shalt.err (!%p606_p5)
}
  0x2b   :  { %49 = dma.hbm_to_vmem [thread:$0]  %s770_s2, 256, %s44_s8, [#allocation6], %s660_s23, %s660_s23, %s661_s24  }
  0x2c   :  { %s664_s13 = smov [#allocation10]  }
  0x2d   :  { %s67_s14 = sshll.u32 %s664_s13, 4  ;;  %s68_s14 = int_to_ptr.vmem [resolvable:$true] %s67_s14 }
  0x2e   :  { %s618_s15 = scalar_lea.vmem %s68_s14, 256  ;;  %p623_p7 = scmp.lt.s32.totalorder %s68_s14, %s68_s14 }
  0x2f   :  { %p619_p6 = scmp.ne.s32.totalorder %s68_s14, %s618_s15  ;;  %p624_p8 = scmp.lt.s32.totalorder %s618_s15, %s618_s15 }
  0x31   :  { %p625_p9 = por %p624_p8, %p623_p7 }
  0x33   :  { %p626_p10 = pnand %p625_p9, %p619_p6 }
  0x35   :  { %629 = shalt.err (!%p626_p10)
}
  0x36   :  { %73 = dma.hbm_to_vmem [thread:$0]  %s772_s4, 256, %s68_s14, [#allocation9], %s660_s23, %s660_s23, %s661_s24  }
  0x37   :  { %650 = dma.done.wait [#allocation3], 256  }
  0x38   :  { %651 = vsyncadd [#allocation3], 4294967040 }
  0x39   :  { %652 = dma.done.wait [#allocation6], 768  }
  0x3a   :  { %653 = vsyncadd [#allocation6], 4294966528 }
  0x3b   :  { %654 = dma.done.wait [#allocation9], 512  }
  0x3c   :  { %655 = vsyncadd [#allocation9], 4294966784  ;;  %vm95_vm0 = vcmask 261120   ;;  %v94_v0 = vld [vmem:[#allocation5 + $0x18] sm:$0xff]  ;;  %v93_v1 = vld [vmem:[#allocation5 + $0x10] sm:$0xff]  ;;  %s665_s2 = smov 48  }
  0x3d   :  { %483 = vmatprep.subr.mxu0 %v94_v0  ;;  %v89_v2 = vld [vmem:[#allocation2] sm:$0xff]  ;;  %v92_v3 = vld [vmem:[#allocation5 + $0x8] sm:$0xff]  ;;  %v91_v5 = vld [vmem:[#allocation5] sm:$0xff]  ;;  %s666_s4 = smov 112   ;;  %s667_s17 = smov 80   ;;  %vm237_vm1 = vcmask 130048  }
  0x3e   :  { %484 = vmatpush3.msra.mxu0 %v94_v0  ;;  %491 = vmatprep.mubr.msk.f32.mxu0 %vm95_vm0, %v89_v2  ;;  %v179_v4 = vld [vmem:[#allocation8] sm:$0xff]  ;;  %v180_v6 = vld [vmem:[#allocation8 + $0x8] sm:$0xff]  ;;  %s668_s18 = smov 64   ;;  %v177_v15 = vld [vmem:[#allocation7] sm:$0xff]  ;;  %s669_s19 = smov 32  }
  0x3f   :  { %485 = vmatprep.subr.mxu0 %v93_v1  ;;  %185 = vrot.lane.b32.xlu0 %v179_v4, %s665_s2  ;;  %v90_v7 = vld [vmem:[#allocation2 + $0x8] sm:$0xff]  ;;  %v178_v19 = vld [vmem:[#allocation7 + $0x8] sm:$0xff]  ;;  %v325_v28 = vld [vmem:[#allocation10] sm:$0xff]  ;;  %s670_s20 = smov 96   ;;  %s671_s21 = smov [#allocation11]  }
  0x40   :  { %486 = vmatpush3.msra.mxu0 %v93_v1  ;;  %v326_v25 = vld [vmem:[#allocation10 + $0x8] sm:$0xff]  ;;  %s447_s22 = sshll.u32 %s671_s21, 4  ;;  %s448_s22 = int_to_ptr.vmem [resolvable:$true] %s447_s22 }
  0x41   :  { %487 = vmatprep.subr.mxu0 %v92_v3  ;;  %s630_s25 = scalar_lea.vmem %s448_s22, 256  ;;  %p635_p12 = scmp.lt.s32.totalorder %s448_s22, %s448_s22 }
  0x42   :  { %488 = vmatpush3.msra.mxu0 %v92_v3  ;;  %p631_p11 = scmp.ne.s32.totalorder %s448_s22, %s630_s25  ;;  %p636_p13 = scmp.lt.s32.totalorder %s630_s25, %s630_s25 }
  0x43   :  { %489 = vmatprep.subr.mxu0 %v91_v5  ;;  %187 = vrot.lane.b32.xlu0 %v180_v6, %s665_s2 }
  0x44   :  { %490 = vmatpush3.msra.mxu0 %v91_v5  ;;  %p637_p0 = por %p636_p13, %p635_p12 }
  0x45   :  { %492 = vmatmul.mubr.msk.f32.vlgmr.msra.gmra.mxu0 %vm95_vm0, %v90_v7 }
  0x46   :  { %p638_p1 = pnand %p637_p0, %p631_p11 }
  0xb1   :  { %v186_v8 = vpop.permute.xlu0 %185 }
  0xb5   :  { %v188_v12 = vpop.permute.xlu0 %187 }
 0x105   :  { %v734_v9 = vpop.f32.mrf.mxu0 }
 0x106   :  { %235 = vrot.lane.b32.xlu1 %v734_v9, %s666_s4  ;;  %v192_v13 = vmul.f32 %v734_v9, %v188_v12  ;;  %v182_v21 = vmul.f32 %v734_v9, %v178_v19 }
 0x107   :  { %v737_v10 = vpop.f32.mrf.mxu0 }
 0x108   :  { %v191_v11 = vmul.f32 %v186_v8, %v737_v10  ;;  %v181_v16 = vmul.f32 %v177_v15, %v737_v10 }
 0x10a   :  { %233 = vrot.lane.b32.xlu1 %v737_v10, %s666_s4  ;;  %195 = vrot.lane.b32.xlu0 %v191_v11, %s667_s17 }
 0x10e   :  { %197 = vrot.lane.b32.xlu1 %v192_v13, %s667_s17  ;;  %215 = vrot.lane.b32.xlu0 %v180_v6, %s668_s18 }
 0x112   :  { %213 = vrot.lane.b32.xlu1 %v179_v4, %s668_s18 }
 0x178   :  { %v236_v14 = vpop.permute.xlu1 %235 }
 0x179   :  { %494 = vmatprep.subr.msk.mxu1 %vm237_vm1, %v236_v14 }
 0x17a   :  { %495 = vmatpush3.xpose.msk.msra.mxu1 %vm237_vm1, %v236_v14 }
 0x17c   :  { %v234_v17 = vpop.permute.xlu1 %233  ;;  %v196_v18 = vpop.permute.xlu0 %195 }
 0x17d   :  { %v201_v20 = vadd.f32 %v196_v18, %v181_v16  ;;  %496 = vmatprep.subr.msk.mxu1 %vm237_vm1, %v234_v17 }
 0x17e   :  { %497 = vmatpush3.xpose.msk.msra.mxu1 %vm237_vm1, %v234_v17 }
 0x17f   :  { %498 = vmatprep.mubr.msk.f32.mxu1 %vm237_vm1, %v201_v20 }
 0x180   :  { %v198_v22 = vpop.permute.xlu1 %197  ;;  %v216_v36 = vpop.permute.xlu0 %215 }
 0x181   :  { %v202_v23 = vadd.f32 %v198_v22, %v182_v21  ;;  %v220_v37 = vmul.f32 %v734_v9, %v216_v36 }
 0x183   :  { %499 = vmatmul.mubr.msk.f32.vlgmr.msra.gmra.mxu1 %vm237_vm1, %v202_v23 }
 0x184   :  { %v214_v34 = vpop.permute.xlu1 %213 }
 0x185   :  { %v219_v35 = vmul.f32 %v214_v34, %v737_v10 }
 0x243   :  { %v500_v24 = vpop.f32.mrf.mxu1 }
 0x244   :  { %v324_v26 = vmul.f32 0.25, %v500_v24 }
 0x245   :  { %v314_v27 = vpop.f32.mrf.mxu1 }
 0x246   :  { %v323_v29 = vmul.f32 0.25, %v314_v27  ;;  %v328_v30 = vadd.f32 %v326_v25, %v324_v26 }
 0x248   :  { %v327_v31 = vadd.f32 %v325_v28, %v323_v29  ;;  %v332_v32 = vsel %vm237_vm1, %v328_v30, -inf }
 0x249   :  { %333 = vmax.xlane.f32.xlu1 %v332_v32 }
 0x24a   :  { %v329_v33 = vsel %vm237_vm1, %v327_v31, -inf }
 0x24b   :  { %330 = vmax.xlane.f32.xlu0 %v329_v33 }
 0x25a   :  { %205 = vrot.lane.b32.xlu1 %v177_v15, %s669_s19 }
 0x25e   :  { %223 = vrot.lane.b32.xlu1 %v219_v35, %s670_s20 }
 0x261   :  { %207 = vrot.lane.b32.xlu0 %v178_v19, %s669_s19 }
 0x265   :  { %225 = vrot.lane.b32.xlu0 %v220_v37, %s670_s20 }
 0x2d2   :  { %v334_v38 = vpop.xlane.xlu1 %333 }
 0x2d3   :  { %v336_v39 = vsub.f32 %v328_v30, %v334_v38 }
 0x2d4   :  { %v331_v40 = vpop.xlane.xlu0 %330 }
 0x2d5   :  { %v339_v41 = vmul.f32 1.442695, %v336_v39  ;;  %v335_v42 = vsub.f32 %v327_v31, %v331_v40 }
 0x2d6   :  { %v206_v48 = vpop.permute.xlu1 %205 }
 0x2d7   :  { %522 = vpow2.f32 %v339_v41  ;;  %v337_v43 = vmul.f32 1.442695, %v335_v42  ;;  %v211_v50 = vmul.f32 %v206_v48, %v737_v10 }
 0x2d8   :  { %v208_v51 = vpop.permute.xlu0 %207 }
 0x2d9   :  { %524 = vpow2.f32 %v337_v43  ;;  %v212_v54 = vmul.f32 %v734_v9, %v208_v51 }
 0x2da   :  { %v224_v49 = vpop.permute.xlu1 %223 }
 0x2db   :  { %v229_v52 = vadd.f32 %v224_v49, %v211_v50 }
 0x2dc   :  { %v226_v53 = vpop.permute.xlu0 %225 }
 0x2dd   :  { %v230_v55 = vadd.f32 %v226_v53, %v212_v54 }
 0x2e4   :  { %v523_v44 = vpop.eup %522 }
 0x2e5   :  { %v344_v45 = vsel %vm237_vm1, %v523_v44, 0.0 }
 0x2e6   :  { %v525_v46 = vpop.eup %524  ;;  %345 = vadd.xlane.f32.xlu1 %v344_v45 }
 0x2e7   :  { %v341_v47 = vsel %vm237_vm1, %v525_v46, 0.0 }
 0x2e8   :  { %342 = vadd.xlane.f32.xlu0 %v341_v47 }
 0x2f7   :  { %353 = vrot.lane.b32.xlu1 %v229_v52, %s670_s20 }
 0x2fe   :  { %355 = vrot.lane.b32.xlu0 %v230_v55, %s670_s20 }
 0x36f   :  { %v346_v56 = vpop.xlane.xlu1 %345 }
 0x370   :  { %526 = vrcp.f32 %v346_v56 }
 0x371   :  { %v343_v57 = vpop.xlane.xlu0 %342 }
 0x372   :  { %528 = vrcp.f32 %v343_v57 }
 0x373   :  { %v354_v59 = vpop.permute.xlu1 %353 }
 0x375   :  { %v356_v58 = vpop.permute.xlu0 %355 }
 0x376   :  { %501 = vmatprep.subr.mxu0 %v356_v58 }
 0x377   :  { %502 = vmatpush3.msra.mxu0 %v356_v58 }
 0x378   :  { %503 = vmatprep.subr.mxu0 %v354_v59 }
 0x379   :  { %504 = vmatpush3.msra.mxu0 %v354_v59 }
 0x37d   :  { %v527_v60 = vpop.eup %526 }
 0x37e   :  { %v350_v63 = vmul.f32 %v527_v60, %v523_v44 }
 0x37f   :  { %v529_v61 = vpop.eup %528 }
 0x380   :  { %v349_v62 = vmul.f32 %v529_v61, %v525_v46 }
 0x382   :  { %505 = vmatprep.mubr.msk.f32.mxu0 %vm237_vm1, %v349_v62 }
 0x383   :  { %506 = vmatmul.mubr.msk.f32.vlgmr.msra.gmra.mxu0 %vm237_vm1, %v350_v63 }
 0x443   :  { %v507_v0 = vpop.f32.mrf.mxu0 }
 0x444   :  { %441 = vst.msk [vmem:[#allocation11 + $0x8] sm:$0xff] %vm237_vm1, %v507_v0 }
 0x445   :  { %v431_v1 = vpop.f32.mrf.mxu0 }
 0x446   :  { %440 = vst.msk [vmem:[#allocation11] sm:$0xff] %vm237_vm1, %v431_v1 }
 0x447   :  { %641 = shalt.err (!%p638_p1)
}
 0x448   :  { %453 = dma.vmem_to_hbm [thread:$0]  %s448_s22, 256, %s773_s5, [#allocation4], %s660_s23, %s660_s23, %s661_s24  }
 0x449   :  { %656 = dma.done.wait [#allocation4], 256  }
 0x44a   :  { %657 = vsyncadd [#allocation4], 4294967040 }
 0x44b   :  { %457 = vsyncpa [#allocation3], 1 }
 0x44c   :  { %458 = vsyncpa [#allocation6], 1 }
 0x44d   :  { %459 = vsyncpa [#allocation9], 1 }
 0x44e   :  { %460 = vsyncpa [#allocation4], 1 }

</bundles_post_ra>
